<compile_context>
chip_gen: v7x
topology: tpu7x:2x2x1
jax: 0.10.0
libtpu: 0.0.40
codegen_flags: <defaults>
</compile_context>

<pallas_src>
import functools

import jax
import jax.numpy as jnp
from jax.experimental import pallas as pl
from jax.experimental.pallas import tpu as pltpu

EPSILON = 1e-6


def _dice_partial_kernel(x_ref, t_ref, inter_ref, denom_ref, *,
                         valid_len, block_len, num_j, mask_from):
    """Accumulates per-row sum(sigmoid(x)*t) and sum(sigmoid(x)+t)."""
    p_idx = pl.program_id(0)
    j = pl.program_id(1)

    @pl.when(j == 0)
    def _():
        inter_ref[...] = jnp.zeros_like(inter_ref)
        denom_ref[...] = jnp.zeros_like(denom_ref)

    def _accumulate(mask_tail):
        x = x_ref[...].astype(jnp.float32)            # (M, ts)
        t = t_ref[...].astype(jnp.float32)            # (M, ts)
        # sigmoid(x) == 0.5 * tanh(0.5 * x) + 0.5 : one EUP op, stable.
        prob = 0.5 * jnp.tanh(0.5 * x) + 0.5
        if mask_tail:
            # Logical (unclamped) block id; masks both the ragged last block
            # and any fully out-of-range overshoot block.
            g = p_idx * num_j + j
            lane = jax.lax.broadcasted_iota(jnp.int32, prob.shape, 1)
            in_bounds = (g * block_len + lane) < valid_len
            prob = jnp.where(in_bounds, prob, 0.0)
            t = jnp.where(in_bounds, t, 0.0)
        inter_ref[...] += jnp.sum(prob * t, axis=1, keepdims=True)
        denom_ref[...] += jnp.sum(prob + t, axis=1, keepdims=True)

    if mask_from is None:
        # Spatial extent divides the block width and the grid covers exactly
        # the real blocks: no masking anywhere (common fast path).
        _accumulate(False)
    else:
        g = p_idx * num_j + j

        @pl.when(g < mask_from)
        def _():
            _accumulate(False)

        @pl.when(g >= mask_from)
        def _():
            _accumulate(True)


def _round_up(x, m):
    return ((x + m - 1) // m) * m


def _vmem_limit_bytes():
    """Per-generation scoped-VMEM limit with safe fallbacks."""
    cap = None
    try:
        cap = int(pltpu.get_tpu_info().vmem_capacity_bytes)
    except Exception:
        cap = None
    kind = ""
    try:
        kind = jax.devices()[0].device_kind.lower()
    except Exception:
        pass
    if cap is None:
        cap = 64 * 1024 * 1024                       # conservative default
    limit = min((cap * 3) // 4, 96 * 1024 * 1024)    # 128 MiB parts -> 96 MiB
    if "v7" in kind or "7x" in kind:
        limit = min(limit, 44 * 1024 * 1024)         # 64 MiB/TC part: headroom
    return max(limit, 16 * 1024 * 1024)


def per_channel_dice_loss(logits, targets, *, epsilon=EPSILON,
                          max_block_lanes=None):
    """logits, targets: NCHW arrays (any float dtype). Returns scalar f32 loss."""
    assert logits.shape == targets.shape
    B, C, H, W = logits.shape
    M = B * C
    S = H * W

    # Free reshapes only (no transpose / pad / dtype conversion in HBM): each
    # (b, c) channel becomes one sublane row of an (M, S) slab.
    lg = logits.reshape(M, S)
    tg = targets.reshape(M, S)

    isz_lg = jnp.dtype(logits.dtype).itemsize
    isz_tg = jnp.dtype(targets.dtype).itemsize
    mpad_lg = _round_up(M, max(8, 32 // isz_lg))     # sublane packing per dtype
    mpad_tg = _round_up(M, max(8, 32 // isz_tg))
    mpad_32 = _round_up(M, 8)

    vmem_limit = _vmem_limit_bytes()
    input_budget = (vmem_limit * 7) // 10            # headroom for outputs/misc

    # Dtype-aware block sizing: double-buffered inputs + f32 temporaries that
    # the elementwise chain materializes inside the kernel.
    bytes_per_lane = (2 * (mpad_lg * isz_lg + mpad_tg * isz_tg)
                      + 6 * mpad_32 * 4)
    max_ts = max(128, (input_budget // bytes_per_lane) // 128 * 128)
    if max_block_lanes is not None:
        max_ts = max(128, min(max_ts, (max_block_lanes // 128) * 128))

    if S <= max_ts:
        if S > 1024:
            # Split into (at least) two blocks so both TensorCores get work on
            # dual-core parts (v7x); negligible cost on single-core parts.
            ts = min(max_ts, ((S + 255) // 256) * 128)
        else:
            ts = S
    else:
        ts = max_ts
    ts = min(ts, S)

    num_blocks = pl.cdiv(S, ts)
    P = 2 if num_blocks >= 2 else 1                  # megacore split on v7x
    num_j = pl.cdiv(num_blocks, P)

    tail_ragged = (S % ts) != 0
    overshoot = (P * num_j) > num_blocks
    if tail_ragged:
        mask_from = num_blocks - 1
    elif overshoot:
        mask_from = num_blocks
    else:
        mask_from = None

    if overshoot:
        def in_idx(p, j):
            return (0, jnp.minimum(p * num_j + j, num_blocks - 1))
    else:
        def in_idx(p, j):
            return (0, p * num_j + j)

    kernel = functools.partial(
        _dice_partial_kernel,
        valid_len=S, block_len=ts, num_j=num_j, mask_from=mask_from)

    inter_pb, denom_pb = pl.pallas_call(
        kernel,
        out_shape=(
            jax.ShapeDtypeStruct((P, M, 1), jnp.float32),
            jax.ShapeDtypeStruct((P, M, 1), jnp.float32),
        ),
        grid_spec=pltpu.PrefetchScalarGridSpec(
            num_scalar_prefetch=0,
            grid=(P, num_j),
            in_specs=[
                pl.BlockSpec((M, ts), in_idx),
                pl.BlockSpec((M, ts), in_idx),
            ],
            out_specs=[
                pl.BlockSpec((None, M, 1), lambda p, j: (p, 0, 0)),
                pl.BlockSpec((None, M, 1), lambda p, j: (p, 0, 0)),
            ],
        ),
        compiler_params=pltpu.CompilerParams(
            dimension_semantics=("parallel", "arbitrary"),
            vmem_limit_bytes=vmem_limit,
        ),
    )(lg, tg)

    # Tiny epilogue in plain JAX: combine the per-(p, b, c) partials.
    inter_c = jnp.sum(inter_pb[:, :, 0], axis=0).reshape(B, C).sum(axis=0)
    denom_c = jnp.sum(denom_pb[:, :, 0], axis=0).reshape(B, C).sum(axis=0)
    dice = (2.0 * inter_c + epsilon) / (denom_c + epsilon)
    return jnp.mean(1.0 - dice)


def per_channel_dice_loss_ref(logits, targets, epsilon=EPSILON):
    """Pure-JAX reference mirroring the PyTorch forward."""
    probs = jax.nn.sigmoid(logits.astype(jnp.float32))
    t = targets.astype(jnp.float32)
    C = logits.shape[1]
    total = 0.0
    for c in range(C):
        p = probs[:, c].reshape(-1)
        tc = t[:, c].reshape(-1)
        inter = jnp.sum(p * tc)
        dice = (2.0 * inter + epsilon) / (jnp.sum(p) + jnp.sum(tc) + epsilon)
        total = total + (1.0 - dice)
    return total / C


if __name__ == "__main__":
    key = jax.random.PRNGKey(0)
    ks = jax.random.split(key, 6)

    # Case 1: shapes implied by the module (NCHW), f32.
    B, C, H, W = 2, 4, 16, 16
    logits = jax.random.normal(ks[0], (B, C, H, W), dtype=jnp.float32)
    targets = (jax.random.uniform(ks[1], (B, C, H, W)) > 0.5).astype(jnp.float32)
    loss = jax.block_until_ready(per_channel_dice_loss(logits, targets))
    ref = per_channel_dice_loss_ref(logits, targets)
    assert jnp.allclose(loss, ref, atol=1e-5, rtol=1e-5), (loss, ref)

    # Case 2: odd channel count, non-128-multiple spatial extent (single block).
    lg2 = jax.random.normal(ks[2], (2, 3, 10, 10), dtype=jnp.float32)
    tg2 = (jax.random.uniform(ks[3], (2, 3, 10, 10)) > 0.5).astype(jnp.float32)
    loss2 = jax.block_until_ready(per_channel_dice_loss(lg2, tg2))
    ref2 = per_channel_dice_loss_ref(lg2, tg2)
    assert jnp.allclose(loss2, ref2, atol=1e-5, rtol=1e-5), (loss2, ref2)

    # Case 3: bf16 inputs, forced small blocks -> multi-block spatial split
    # with a ragged tail and an overshoot block (exercises the masked paths,
    # the dual-chunk parallel axis, and the dtype-aware sizing).
    lg3 = jax.random.normal(ks[4], (1, 2, 37, 37), dtype=jnp.bfloat16)
    tg3 = (jax.random.uniform(ks[5], (1, 2, 37, 37)) > 0.5).astype(jnp.bfloat16)
    loss3 = jax.block_until_ready(
        per_channel_dice_loss(lg3, tg3, max_block_lanes=512))
    ref3 = per_channel_dice_loss_ref(lg3, tg3)
    assert jnp.allclose(loss3, ref3, atol=1e-4, rtol=1e-4), (loss3, ref3)

    print("KERNEL_OK")
</pallas_src>

<mosaic_0001>
module attributes {stable_mosaic.version = 11 : i64} {
  func.func @_dice_partial_kernel(%arg0: i32, %arg1: i32, %arg2: memref<8x256xf32, #tpu.memory_space<vmem>>, %arg3: memref<8x256xf32, #tpu.memory_space<vmem>>, %arg4: memref<1x8x1xf32, #tpu.memory_space<vmem>>, %arg5: memref<1x8x1xf32, #tpu.memory_space<vmem>>) attributes {dimension_semantics = [#tpu.dimension_semantics<parallel>, #tpu.dimension_semantics<arbitrary>], iteration_bounds = array<i64: 1, 1>, scalar_prefetch = 0 : i64, scratch_operands = 0 : i64, tpu.core_type = #tpu.core_type<tc>, window_params = [{transform_indices = @transform_0, window_bounds = array<i64: 8, 256>}, {transform_indices = @transform_1, window_bounds = array<i64: 8, 256>}, {transform_indices = @transform_2, window_bounds = array<i64: 1, 8, 1>}, {transform_indices = @transform_3, window_bounds = array<i64: 1, 8, 1>}]} {
    %c0_i32 = arith.constant 0 : i32
    %0 = arith.cmpi eq, %arg1, %c0_i32 : i32
    %1 = arith.extui %0 : i1 to i32
    %c0_i32_0 = arith.constant 0 : i32
    %2 = arith.cmpi ne, %1, %c0_i32_0 : i32
    scf.if %2 {
      %cst_20 = arith.constant 0.000000e+00 : f32
      %30 = vector.broadcast %cst_20 : f32 to vector<8x1xf32>
      %c0_21 = arith.constant 0 : index
      %c0_22 = arith.constant 0 : index
      %c0_23 = arith.constant 0 : index
      %31 = vector.load %arg4[%c0_21, %c0_22, %c0_23] : memref<1x8x1xf32, #tpu.memory_space<vmem>>, vector<1x8x1xf32>
      %32 = vector.shape_cast %31 : vector<1x8x1xf32> to vector<8x1xf32>
      %33 = vector.shape_cast %30 : vector<8x1xf32> to vector<1x8x1xf32>
      tpu.vector_store %arg4[%c0_21, %c0_22, %c0_23], %33 {strides = array<i32>} : memref<1x8x1xf32, #tpu.memory_space<vmem>>, vector<1x8x1xf32>,
      %cst_24 = arith.constant 0.000000e+00 : f32
      %34 = vector.broadcast %cst_24 : f32 to vector<8x1xf32>
      %c0_25 = arith.constant 0 : index
      %c0_26 = arith.constant 0 : index
      %c0_27 = arith.constant 0 : index
      %35 = vector.load %arg5[%c0_25, %c0_26, %c0_27] : memref<1x8x1xf32, #tpu.memory_space<vmem>>, vector<1x8x1xf32>
      %36 = vector.shape_cast %35 : vector<1x8x1xf32> to vector<8x1xf32>
      %37 = vector.shape_cast %34 : vector<8x1xf32> to vector<1x8x1xf32>
      tpu.vector_store %arg5[%c0_25, %c0_26, %c0_27], %37 {strides = array<i32>} : memref<1x8x1xf32, #tpu.memory_space<vmem>>, vector<1x8x1xf32>,
    } else {
    }
    %c0 = arith.constant 0 : index
    %c0_1 = arith.constant 0 : index
    %3 = vector.load %arg2[%c0, %c0_1] : memref<8x256xf32, #tpu.memory_space<vmem>>, vector<8x256xf32>
    %c0_2 = arith.constant 0 : index
    %c0_3 = arith.constant 0 : index
    %4 = vector.load %arg3[%c0_2, %c0_3] : memref<8x256xf32, #tpu.memory_space<vmem>>, vector<8x256xf32>
    %cst = arith.constant 5.000000e-01 : f32
    %5 = vector.broadcast %cst : f32 to vector<8x256xf32>
    %6 = arith.mulf %5, %3 : vector<8x256xf32>
    %7 = math.tanh %6 : vector<8x256xf32>
    %cst_4 = arith.constant 5.000000e-01 : f32
    %8 = vector.broadcast %cst_4 : f32 to vector<8x256xf32>
    %9 = arith.mulf %8, %7 : vector<8x256xf32>
    %cst_5 = arith.constant 5.000000e-01 : f32
    %10 = vector.broadcast %cst_5 : f32 to vector<8x256xf32>
    %11 = arith.addf %9, %10 : vector<8x256xf32>
    %c0_6 = arith.constant 0 : index
    %c0_7 = arith.constant 0 : index
    %c0_8 = arith.constant 0 : index
    %12 = vector.load %arg4[%c0_6, %c0_7, %c0_8] : memref<1x8x1xf32, #tpu.memory_space<vmem>>, vector<1x8x1xf32>
    %13 = vector.shape_cast %12 : vector<1x8x1xf32> to vector<8x1xf32>
    %14 = arith.mulf %11, %4 : vector<8x256xf32>
    %cst_9 = arith.constant dense<0.000000e+00> : vector<8xf32>
    %15 = vector.multi_reduction <add>, %14, %cst_9 [1] : vector<8x256xf32> to vector<8xf32>
    %16 = vector.shape_cast %15 : vector<8xf32> to vector<8x1xf32>
    %17 = arith.addf %13, %16 : vector<8x1xf32>
    %c0_10 = arith.constant 0 : index
    %c0_11 = arith.constant 0 : index
    %c0_12 = arith.constant 0 : index
    %18 = vector.load %arg4[%c0_10, %c0_11, %c0_12] : memref<1x8x1xf32, #tpu.memory_space<vmem>>, vector<1x8x1xf32>
    %19 = vector.shape_cast %18 : vector<1x8x1xf32> to vector<8x1xf32>
    %20 = vector.shape_cast %17 : vector<8x1xf32> to vector<1x8x1xf32>
    tpu.vector_store %arg4[%c0_10, %c0_11, %c0_12], %20 {strides = array<i32>} : memref<1x8x1xf32, #tpu.memory_space<vmem>>, vector<1x8x1xf32>,
    %c0_13 = arith.constant 0 : index
    %c0_14 = arith.constant 0 : index
    %c0_15 = arith.constant 0 : index
    %21 = vector.load %arg5[%c0_13, %c0_14, %c0_15] : memref<1x8x1xf32, #tpu.memory_space<vmem>>, vector<1x8x1xf32>
    %22 = vector.shape_cast %21 : vector<1x8x1xf32> to vector<8x1xf32>
    %23 = arith.addf %11, %4 : vector<8x256xf32>
    %cst_16 = arith.constant dense<0.000000e+00> : vector<8xf32>
    %24 = vector.multi_reduction <add>, %23, %cst_16 [1] : vector<8x256xf32> to vector<8xf32>
    %25 = vector.shape_cast %24 : vector<8xf32> to vector<8x1xf32>
    %26 = arith.addf %22, %25 : vector<8x1xf32>
    %c0_17 = arith.constant 0 : index
    %c0_18 = arith.constant 0 : index
    %c0_19 = arith.constant 0 : index
    %27 = vector.load %arg5[%c0_17, %c0_18, %c0_19] : memref<1x8x1xf32, #tpu.memory_space<vmem>>, vector<1x8x1xf32>
    %28 = vector.shape_cast %27 : vector<1x8x1xf32> to vector<8x1xf32>
    %29 = vector.shape_cast %26 : vector<8x1xf32> to vector<1x8x1xf32>
    tpu.vector_store %arg5[%c0_17, %c0_18, %c0_19], %29 {strides = array<i32>} : memref<1x8x1xf32, #tpu.memory_space<vmem>>, vector<1x8x1xf32>,
    return
  }
  func.func @transform_0(%arg0: i32, %arg1: i32) -> (i32, i32) {
    %c1_i32 = arith.constant 1 : i32
    %0 = arith.muli %arg0, %c1_i32 : i32
    %1 = arith.addi %0, %arg1 : i32
    %c0_i32 = arith.constant 0 : i32
    %c0_i32_0 = arith.constant 0 : i32
    return %c0_i32, %1 : i32, i32
  }
  func.func @transform_1(%arg0: i32, %arg1: i32) -> (i32, i32) {
    %c1_i32 = arith.constant 1 : i32
    %0 = arith.muli %arg0, %c1_i32 : i32
    %1 = arith.addi %0, %arg1 : i32
    %c0_i32 = arith.constant 0 : i32
    %c0_i32_0 = arith.constant 0 : i32
    return %c0_i32, %1 : i32, i32
  }
  func.func @transform_2(%arg0: i32, %arg1: i32) -> (i32, i32, i32) {
    %c0_i32 = arith.constant 0 : i32
    %c0_i32_0 = arith.constant 0 : i32
    %c0_i32_1 = arith.constant 0 : i32
    return %arg0, %c0_i32, %c0_i32_0 : i32, i32, i32
  }
  func.func @transform_3(%arg0: i32, %arg1: i32) -> (i32, i32, i32) {
    %c0_i32 = arith.constant 0 : i32
    %c0_i32_0 = arith.constant 0 : i32
    %c0_i32_1 = arith.constant 0 : i32
    return %arg0, %c0_i32, %c0_i32_0 : i32, i32, i32
  }
}

</mosaic_0001>

<bundles_post_ra>
// kernel: tpu_custom_call.1
= control target key start
LH: loop header
LB: loop body
LE: loop exit
PB: predicated region body
PF: predicated region fallthrough
CT: control target
= control target key end

     0   :  { %9 = vsyncpa [#allocation3], 0  ;;  %s219_s0 = inlined_call_operand.hbm [shape: f32[8,256], index: 0, kind: input, shape index: {}]   ;;  %s220_s1 = inlined_call_operand.hbm [shape: f32[8,256], index: 1, kind: input, shape index: {}]   ;;  %s221_s2 = inlined_call_operand.vmem [shape: f32[1,8,1], index: 2, kind: output, shape index: {0}]   ;;  %s222_s3 = inlined_call_operand.vmem [shape: f32[1,8,1], index: 3, kind: output, shape index: {1}]  }
   0x1   :  { %10 = vsyncpa [#allocation5], 0  ;;  %s150_s12 = smov [#allocation2]   ;;  %s151_s14 = smov [#allocation4]  }
   0x2   :  { %s21_s13 = sshll.u32 %s150_s12, 4  ;;  %s35_s15 = sshll.u32 %s151_s14, 4  ;;  %s22_s13 = int_to_ptr.vmem [resolvable:$true] %s21_s13  ;;  %s36_s15 = int_to_ptr.vmem [resolvable:$true] %s35_s15 }
   0x3   :  { %s102_s18 = scalar_lea.hbm %s219_s0, 256 }
   0x4   :  { %p103_p0 = scmp.ne.s32.totalorder %s219_s0, %s102_s18  ;;  %p106_p1 = scmp.lt.u32.totalorder %s102_s18, %s219_s0 }
   0x6   :  { %p108_p2 = pnand %p106_p1, %p103_p0 }
   0x8   :  { %111 = shalt.err (!%p108_p2)
}
   0x9   :  { %s112_s23 = scalar_lea.vmem %s22_s13, 256  ;;  %p117_p4 = scmp.lt.s32.totalorder %s22_s13, %s22_s13 }
   0xa   :  { %p113_p3 = scmp.ne.s32.totalorder %s22_s13, %s112_s23  ;;  %p118_p5 = scmp.lt.s32.totalorder %s112_s23, %s112_s23 }
   0xc   :  { %p119_p6 = por %p118_p5, %p117_p4 }
   0xe   :  { %p120_p7 = pnand %p119_p6, %p113_p3 }
  0x10   :  { %123 = shalt.err (!%p120_p7)
}
  0x11   :  { %24 = dma.hbm_to_vmem [thread:$0]  %s219_s0, 256, %s22_s13, [#allocation3]  }
  0x12   :  { %s124_s28 = scalar_lea.hbm %s220_s1, 256 }
  0x13   :  { %p125_p8 = scmp.ne.s32.totalorder %s220_s1, %s124_s28  ;;  %p128_p9 = scmp.lt.u32.totalorder %s124_s28, %s220_s1 }
  0x15   :  { %p130_p10 = pnand %p128_p9, %p125_p8 }
  0x17   :  { %133 = shalt.err (!%p130_p10)
}
  0x18   :  { %s134_s6 = scalar_lea.vmem %s36_s15, 256  ;;  %p139_p12 = scmp.lt.s32.totalorder %s36_s15, %s36_s15 }
  0x19   :  { %p135_p11 = scmp.ne.s32.totalorder %s36_s15, %s134_s6  ;;  %p140_p13 = scmp.lt.s32.totalorder %s134_s6, %s134_s6 }
  0x1b   :  { %p141_p0 = por %p140_p13, %p139_p12 }
  0x1d   :  { %p142_p1 = pnand %p141_p0, %p135_p11 }
  0x1f   :  { %145 = shalt.err (!%p142_p1)
}
  0x20   :  { %38 = dma.hbm_to_vmem [thread:$0]  %s220_s1, 256, %s36_s15, [#allocation5]  }
  0x21   :  { %146 = dma.done.wait [#allocation3], 256  }
  0x22   :  { %147 = vsyncadd [#allocation3], 4294967040 }
  0x23   :  { %148 = dma.done.wait [#allocation5], 256  }
  0x24   :  { %149 = vsyncadd [#allocation5], 4294967040  ;;  %vm53_vm0 = vcmask 7168   ;;  %v152_v0 = vmov 0.0   ;;  %v56_v1 = vld [vmem:[#allocation2] sm:$0xff]  ;;  %v57_v2 = vld [vmem:[#allocation2 + $0x8] sm:$0xff] }
  0x25   :  { %54 = vst.msk [vmem:[%s221_s2] sm:$0xff] %vm53_vm0, %v152_v0  ;;  %55 = vst.msk [vmem:[%s222_s3] sm:$0xff] %vm53_vm0, %v152_v0  ;;  %v60_v3 = vmul.f32 0.5, %v56_v1  ;;  %v61_v4 = vmul.f32 0.5, %v57_v2  ;;  %v58_v8 = vld [vmem:[#allocation4] sm:$0xff]  ;;  %v59_v10 = vld [vmem:[#allocation4 + $0x8] sm:$0xff] }
  0x27   :  { %98 = vtanh.f32 %v60_v3 }
  0x28   :  { %100 = vtanh.f32 %v61_v4 }
  0x2c   :  { %v68_v19 = vld [vmem:[%s221_s2] sm:$0xff] }
  0x2d   :  { %v77_v22 = vld [vmem:[%s222_s3] sm:$0xff] }
  0x31   :  { %v99_v5 = vpop.eup %98 }
  0x32   :  { %v101_v6 = vpop.eup %100  ;;  %v64_v7 = vmul.f32 0.5, %v99_v5 }
  0x33   :  { %v65_v9 = vmul.f32 0.5, %v101_v6 }
  0x34   :  { %v66_v11 = vadd.f32 0.5, %v64_v7 }
  0x35   :  { %v67_v12 = vadd.f32 0.5, %v65_v9 }
  0x36   :  { %v69_v13 = vmul.f32 %v66_v11, %v58_v8  ;;  %v78_v15 = vadd.f32 %v66_v11, %v58_v8 }
  0x37   :  { %v70_v14 = vmul.f32 %v67_v12, %v59_v10  ;;  %v79_v16 = vadd.f32 %v67_v12, %v59_v10 }
  0x39   :  { %v71_v17 = vadd.f32 %v70_v14, %v69_v13  ;;  %v80_v18 = vadd.f32 %v79_v16, %v78_v15 }
  0x3b   :  { %72 = vadd.xlane.f32.xlu0 %v71_v17 }
  0x3f   :  { %81 = vadd.xlane.f32.xlu0 %v80_v18 }
  0xc8   :  { %v73_v20 = vpop.xlane.xlu0 %72 }
  0xc9   :  { %v74_v21 = vadd.f32 %v73_v20, %v68_v19 }
  0xcb   :  { %76 = vst.msk [vmem:[%s221_s2] sm:$0xff] %vm53_vm0, %v74_v21 }
  0xcc   :  { %v82_v23 = vpop.xlane.xlu0 %81 }
  0xcd   :  { %v83_v24 = vadd.f32 %v82_v23, %v77_v22 }
  0xcf   :  { %84 = vst.msk [vmem:[%s222_s3] sm:$0xff] %vm53_vm0, %v83_v24 }
  0xd0   :  { %93 = vsyncpa [#allocation3], 1 }
  0xd1   :  { %94 = vsyncpa [#allocation5], 1 }

</bundles_post_ra>
